<compile_context>
chip_gen: v7x
topology: tpu7x:2x2x1
jax: 0.10.0
libtpu: 0.0.40
codegen_flags: <defaults>
</compile_context>

<pallas_src>
import functools

import numpy as np
import jax
import jax.numpy as jnp
from jax import lax
from jax.experimental import pallas as pl
from jax.experimental.pallas import tpu as pltpu


def _round_up(a, b):
    return (a + b - 1) // b * b


def _rbf_tile_kernel(coeff_ref, xr_ref, xc_ref, sqc_ref, o_ref, acc_ref, *,
                     n_kernels, use_pow2):
    # coeff_ref: (n_kernels,) f32 in SMEM, coeff[k] = -1 / (bw * mult_k)
    # xr_ref:    (TM, DC)   row block of X for current D chunk
    # xc_ref:    (TN, DC)   col block of X for current D chunk
    # sqc_ref:   (1, TN)    total col squared norms (k-invariant stream)
    # o_ref:     (TM, TN)   output tile
    # acc_ref:   (TM, TN)   f32 VMEM accumulator across D chunks
    k = pl.program_id(2)

    @pl.when(k == 0)
    def _():
        acc_ref[...] = jnp.zeros_like(acc_ref)

    xr = xr_ref[...]
    xc = xc_ref[...]

    # Partial gram on the MXU; contract the lane axis of both operands
    # (A @ B^T) -> no in-kernel transpose of the column block.
    gram = lax.dot_general(xr, xc, (((1,), (1,)), ((), ())),
                           preferred_element_type=jnp.float32)

    # Per-chunk partial row norms in kernel (natural (TM,1) layout, VPU/XLU
    # slack); summed over D chunks they give the exact total row norms.
    xr32 = xr.astype(jnp.float32)
    sqr = jnp.sum(xr32 * xr32, axis=-1, keepdims=True)        # (TM, 1)

    acc_ref[...] += sqr - 2.0 * gram

    @pl.when(k == pl.num_programs(2) - 1)
    def _():
        l2 = jnp.maximum(acc_ref[...] + sqc_ref[...], 0.0)
        if use_pow2:
            # Multipliers form a geometric progression with ratio 2, so every
            # term is t^(2^j) with t = exp(-l2 / (bw * max_mult)) (the
            # smallest-magnitude exponent).  One EUP exp per element; the rest
            # is 4-wide-VALU squaring.  Underflow of t^(2^j) to 0 happens only
            # where the true term is ~0 (benign).
            t = jnp.exp(l2 * coeff_ref[n_kernels - 1])
            acc = t
            for _ in range(n_kernels - 1):
                t = t * t
                acc = acc + t
        else:
            acc = jnp.zeros_like(l2)
            for kk in range(n_kernels):            # static trip count
                acc = acc + jnp.exp(l2 * coeff_ref[kk])
        o_ref[...] = acc.astype(o_ref.dtype)


def rbf_forward(x, n_kernels=5, mul_factor=2.0, bandwidth=None,
                gram_dtype=jnp.float32):
    """Pallas implementation of RBF.forward(X).

    gram_dtype=jnp.bfloat16 streams X and runs the MXU gram in bf16
    (~2x HBM / native MXU rate); keep the f32 default for bit-faithful results.
    """
    n, d = x.shape
    x32 = x.astype(jnp.float32)

    # Mean-center: distances are translation invariant; this removes
    # catastrophic cancellation in f32 for data with a large common offset.
    x32 = x32 - jnp.mean(x32, axis=0, keepdims=True)

    # Deterministic "parameters" exactly as in __init__:
    #   mul_factor ** (arange(n_kernels) - n_kernels // 2)
    mults = (mul_factor ** (jnp.arange(n_kernels) - n_kernels // 2)).astype(
        jnp.float32)

    # --- analytic bandwidth in the wrapper (O(N*D)) ------------------------
    sq = jnp.sum(x32 * x32, axis=-1)                           # (N,)
    if bandwidth is None:
        col_sum = jnp.sum(x32, axis=0)                         # (D,)
        total_l2 = 2.0 * n * jnp.sum(sq) - 2.0 * jnp.sum(col_sum * col_sum)
        bw = total_l2 / float(n * n - n)
    else:
        bw = jnp.float32(bandwidth)
    coeffs = (-1.0 / (bw * mults)).astype(jnp.float32)         # (n_kernels,)

    # --- tiling: pad N only to a multiple of 128, grow tile when it divides -
    n_pad = _round_up(max(n, 128), 128)
    tile = 128
    for cand in (512, 256):
        if n_pad % cand == 0:
            tile = cand
            break

    # --- D chunking: bound VMEM independent of D ---------------------------
    max_chunk = 512
    if d <= max_chunk:
        d_chunk, d_pad = d, d
    else:
        d_chunk = max_chunk
        d_pad = _round_up(d, d_chunk)

    x_p = jnp.pad(x32, ((0, n_pad - n), (0, d_pad - d))).astype(gram_dtype)
    sqc = jnp.pad(sq, (0, n_pad - n)).reshape(1, n_pad)        # (1, N_pad) f32

    use_pow2 = float(mul_factor) == 2.0
    kern = functools.partial(_rbf_tile_kernel, n_kernels=n_kernels,
                             use_pow2=use_pow2)

    bpe = jnp.dtype(gram_dtype).itemsize
    vmem_est = (2 * 2 * tile * d_chunk * bpe   # double-buffered X row/col blocks
                + 2 * tile * tile * 4          # double-buffered output tile
                + tile * tile * 4              # accumulator scratch
                + 2 * 2 * tile * 4)            # col-norm stream
    vmem_limit = int(min(2 * vmem_est + (8 << 20), 48 << 20))

    grid = (n_pad // tile, n_pad // tile, d_pad // d_chunk)
    out = pl.pallas_call(
        kern,
        out_shape=jax.ShapeDtypeStruct((n_pad, n_pad), jnp.float32),
        grid_spec=pltpu.PrefetchScalarGridSpec(
            num_scalar_prefetch=1,                 # coeffs -> SMEM
            grid=grid,
            in_specs=[
                pl.BlockSpec((tile, d_chunk), lambda i, j, k, c: (i, k)),  # X rows
                pl.BlockSpec((tile, d_chunk), lambda i, j, k, c: (j, k)),  # X cols
                pl.BlockSpec((1, tile), lambda i, j, k, c: (0, j)),        # col norms
            ],
            out_specs=pl.BlockSpec((tile, tile), lambda i, j, k, c: (i, j)),
            scratch_shapes=[pltpu.VMEM((tile, tile), jnp.float32)],
        ),
        compiler_params=pltpu.CompilerParams(
            dimension_semantics=("parallel", "parallel", "arbitrary"),
            vmem_limit_bytes=vmem_limit),
    )(coeffs, x_p, x_p, sqc)

    return out[:n, :n]


def _rbf_reference(x, n_kernels=5, mul_factor=2.0):
    """Pure-JAX reference mirroring the PyTorch module."""
    x = x.astype(jnp.float32)
    mults = (mul_factor ** (jnp.arange(n_kernels) - n_kernels // 2)).astype(
        jnp.float32)
    diff = x[:, None, :] - x[None, :, :]
    l2 = jnp.sum(diff * diff, axis=-1)                         # (N, N)
    n = x.shape[0]
    bw = jnp.sum(l2) / (n * n - n)
    return jnp.exp(-l2[None, ...] / (bw * mults)[:, None, None]).sum(axis=0)


if __name__ == "__main__":
    key = jax.random.PRNGKey(0)
    N, D = 8, 32                      # seq=8 samples, hidden=32 features
    x = jax.random.normal(key, (N, D), dtype=jnp.float32)

    out = jax.block_until_ready(rbf_forward(x))
    ref = jax.block_until_ready(_rbf_reference(x))

    np.testing.assert_allclose(np.asarray(out), np.asarray(ref),
                               rtol=1e-4, atol=1e-5)
    print("KERNEL_OK")
</pallas_src>

<mosaic_0001>
module attributes {stable_mosaic.version = 11 : i64} {
  func.func @_rbf_tile_kernel(%arg0: i32, %arg1: i32, %arg2: i32, %arg3: memref<5xf32, #tpu.memory_space<smem>>, %arg4: memref<128x32xf32, #tpu.memory_space<vmem>>, %arg5: memref<128x32xf32, #tpu.memory_space<vmem>>, %arg6: memref<1x128xf32, #tpu.memory_space<vmem>>, %arg7: memref<128x128xf32, #tpu.memory_space<vmem>>, %arg8: memref<128x128xf32, #tpu.memory_space<vmem>>) attributes {dimension_semantics = [#tpu.dimension_semantics<parallel>, #tpu.dimension_semantics<parallel>, #tpu.dimension_semantics<arbitrary>], iteration_bounds = array<i64: 1, 1, 1>, scalar_prefetch = 1 : i64, scratch_operands = 1 : i64, tpu.core_type = #tpu.core_type<tc>, window_params = [{transform_indices = @transform_0, window_bounds = array<i64: 128, 32>}, {transform_indices = @transform_1, window_bounds = array<i64: 128, 32>}, {transform_indices = @transform_2, window_bounds = array<i64: 1, 128>}, {transform_indices = @transform_3, window_bounds = array<i64: 128, 128>}]} {
    %c0_i32 = arith.constant 0 : i32
    %0 = arith.cmpi eq, %arg2, %c0_i32 : i32
    %1 = arith.extui %0 : i1 to i32
    %c0_i32_0 = arith.constant 0 : i32
    %2 = arith.cmpi ne, %1, %c0_i32_0 : i32
    scf.if %2 {
      %cst_12 = arith.constant 0.000000e+00 : f32
      %19 = vector.broadcast %cst_12 : f32 to vector<128x128xf32>
      %c0_13 = arith.constant 0 : index
      %c0_14 = arith.constant 0 : index
      %20 = vector.load %arg8[%c0_13, %c0_14] : memref<128x128xf32, #tpu.memory_space<vmem>>, vector<128x128xf32>
      tpu.vector_store %arg8[%c0_13, %c0_14], %19 {strides = array<i32>} : memref<128x128xf32, #tpu.memory_space<vmem>>, vector<128x128xf32>,
    } else {
    }
    %c0 = arith.constant 0 : index
    %c0_1 = arith.constant 0 : index
    %3 = vector.load %arg4[%c0, %c0_1] : memref<128x32xf32, #tpu.memory_space<vmem>>, vector<128x32xf32>
    %c0_2 = arith.constant 0 : index
    %c0_3 = arith.constant 0 : index
    %4 = vector.load %arg5[%c0_2, %c0_3] : memref<128x32xf32, #tpu.memory_space<vmem>>, vector<128x32xf32>
    %cst = arith.constant dense<0.000000e+00> : vector<128x128xf32>
    %5 = tpu.matmul %3, %4, %cst {dimension_numbers = #tpu.dot_dimension_numbers<[1], [1], [0], [0], [0, 0, 1, 0], [], []>} : vector<128x32xf32>, vector<128x32xf32>, vector<128x128xf32> -> vector<128x128xf32>
    %6 = arith.mulf %3, %3 : vector<128x32xf32>
    %cst_4 = arith.constant dense<0.000000e+00> : vector<128xf32>
    %7 = vector.multi_reduction <add>, %6, %cst_4 [1] : vector<128x32xf32> to vector<128xf32>
    %8 = vector.shape_cast %7 : vector<128xf32> to vector<128x1xf32>
    %c0_5 = arith.constant 0 : index
    %c0_6 = arith.constant 0 : index
    %9 = vector.load %arg8[%c0_5, %c0_6] : memref<128x128xf32, #tpu.memory_space<vmem>>, vector<128x128xf32>
    %cst_7 = arith.constant 2.000000e+00 : f32
    %10 = vector.broadcast %cst_7 : f32 to vector<128x128xf32>
    %11 = arith.mulf %10, %5 : vector<128x128xf32>
    %12 = vector.broadcast %8 : vector<128x1xf32> to vector<128x128xf32>
    %13 = arith.subf %12, %11 : vector<128x128xf32>
    %14 = arith.addf %9, %13 : vector<128x128xf32>
    %c0_8 = arith.constant 0 : index
    %c0_9 = arith.constant 0 : index
    %15 = vector.load %arg8[%c0_8, %c0_9] : memref<128x128xf32, #tpu.memory_space<vmem>>, vector<128x128xf32>
    tpu.vector_store %arg8[%c0_8, %c0_9], %14 {strides = array<i32>} : memref<128x128xf32, #tpu.memory_space<vmem>>, vector<128x128xf32>,
    %c0_i32_10 = arith.constant 0 : i32
    %16 = arith.cmpi eq, %arg2, %c0_i32_10 : i32
    %17 = arith.extui %16 : i1 to i32
    %c0_i32_11 = arith.constant 0 : i32
    %18 = arith.cmpi ne, %17, %c0_i32_11 : i32
    scf.if %18 {
      %c0_12 = arith.constant 0 : index
      %c0_13 = arith.constant 0 : index
      %19 = vector.load %arg8[%c0_12, %c0_13] : memref<128x128xf32, #tpu.memory_space<vmem>>, vector<128x128xf32>
      %c0_14 = arith.constant 0 : index
      %c0_15 = arith.constant 0 : index
      %20 = vector.load %arg6[%c0_14, %c0_15] : memref<1x128xf32, #tpu.memory_space<vmem>>, vector<1x128xf32>
      %21 = vector.broadcast %20 : vector<1x128xf32> to vector<128x128xf32>
      %22 = arith.addf %19, %21 : vector<128x128xf32>
      %cst_16 = arith.constant 0.000000e+00 : f32
      %23 = vector.broadcast %cst_16 : f32 to vector<128x128xf32>
      %24 = arith.maximumf %22, %23 : vector<128x128xf32>
      %c4 = arith.constant 4 : index
      %25 = memref.load %arg3[%c4] : memref<5xf32, #tpu.memory_space<smem>>
      %26 = vector.broadcast %25 : f32 to vector<128x128xf32>
      %27 = arith.mulf %24, %26 : vector<128x128xf32>
      %28 = math.exp %27 : vector<128x128xf32>
      %29 = arith.mulf %28, %28 : vector<128x128xf32>
      %30 = arith.addf %28, %29 : vector<128x128xf32>
      %31 = arith.mulf %29, %29 : vector<128x128xf32>
      %32 = arith.addf %30, %31 : vector<128x128xf32>
      %33 = arith.mulf %31, %31 : vector<128x128xf32>
      %34 = arith.addf %32, %33 : vector<128x128xf32>
      %35 = arith.mulf %33, %33 : vector<128x128xf32>
      %36 = arith.addf %34, %35 : vector<128x128xf32>
      %c0_17 = arith.constant 0 : index
      %c0_18 = arith.constant 0 : index
      %37 = vector.load %arg7[%c0_17, %c0_18] : memref<128x128xf32, #tpu.memory_space<vmem>>, vector<128x128xf32>
      tpu.vector_store %arg7[%c0_17, %c0_18], %36 {strides = array<i32>} : memref<128x128xf32, #tpu.memory_space<vmem>>, vector<128x128xf32>,
    } else {
    }
    return
  }
  func.func @transform_0(%arg0: i32, %arg1: i32, %arg2: i32, %arg3: memref<5xf32, #tpu.memory_space<smem>>) -> (i32, i32) {
    %c0_i32 = arith.constant 0 : i32
    return %arg0, %arg2 : i32, i32
  }
  func.func @transform_1(%arg0: i32, %arg1: i32, %arg2: i32, %arg3: memref<5xf32, #tpu.memory_space<smem>>) -> (i32, i32) {
    %c0_i32 = arith.constant 0 : i32
    return %arg1, %arg2 : i32, i32
  }
  func.func @transform_2(%arg0: i32, %arg1: i32, %arg2: i32, %arg3: memref<5xf32, #tpu.memory_space<smem>>) -> (i32, i32) {
    %c0_i32 = arith.constant 0 : i32
    %c0_i32_0 = arith.constant 0 : i32
    return %c0_i32, %arg1 : i32, i32
  }
  func.func @transform_3(%arg0: i32, %arg1: i32, %arg2: i32, %arg3: memref<5xf32, #tpu.memory_space<smem>>) -> (i32, i32) {
    %c0_i32 = arith.constant 0 : i32
    return %arg0, %arg1 : i32, i32
  }
}

</mosaic_0001>

<bundles_post_ra>
// kernel: tpu_custom_call.1
= control target key start
LH: loop header
LB: loop body
LE: loop exit
PB: predicated region body
PF: predicated region fallthrough
CT: control target
= control target key end

     0   :  { %s1353_s0 = inlined_call_operand.vmem [shape: f32[5], index: 0, kind: input, shape index: {}]   ;;  %s1354_s1 = inlined_call_operand.vmem [shape: f32[128,32], index: 1, kind: input, shape index: {}]   ;;  %s1355_s2 = inlined_call_operand.vmem [shape: f32[128,32], index: 2, kind: input, shape index: {}]   ;;  %s1356_s3 = inlined_call_operand.vmem [shape: f32[1,128], index: 3, kind: input, shape index: {}]   ;;  %s1357_s4 = inlined_call_operand.hbm [shape: f32[128,128], index: 4, kind: output, shape index: {}]  }
   0x1   :  { %s9_s17 = sshll.u32 %s1353_s0, 4  ;;  %s10_s17 = int_to_ptr.vmem [resolvable:$true] %s9_s17 }
   0x2   :  { %s950_s18 = scalar_lea.vmem %s10_s17, 16  ;;  %p955_p1 = scmp.lt.s32.totalorder %s10_s17, %s10_s17 }
   0x3   :  { %p951_p0 = scmp.ne.s32.totalorder %s10_s17, %s950_s18  ;;  %p956_p2 = scmp.lt.s32.totalorder %s950_s18, %s950_s18 }
   0x5   :  { %p957_p3 = por %p956_p2, %p955_p1 }
   0x7   :  { %p958_p4 = pnand %p957_p3, %p951_p0 }
   0x9   :  { %961 = shalt.err (!%p958_p4)  }
   0xa   :  { %s988_s19 = smov [#allocation4]  }
   0xb   :  { %12 = dma.vmem_to_smem %s10_s17, 16, %s988_s19, [#allocation3] }
   0xc   :  { %984 = dma.done.wait [#allocation3], 16 }
   0xd   :  { %985 = vsyncadd [#allocation3], 4294967280 }
   0xe   :  { %14 = sfence }
   0xf   :  { %v58_v0 = vld [vmem:[%s1355_s2] sm:$0xff]  ;;  %v59_v1 = vld [vmem:[%s1355_s2 + $0x8] sm:$0xff]  ;;  %vm74_vm0 = vcmask 261120   ;;  %v60_v2 = vld [vmem:[%s1355_s2 + $0x10] sm:$0xff] }
  0x10   :  { %v850_v3 = vpack.c.bf16 %v59_v1, %v58_v0  ;;  %vm1031_vm1 = vmpackc.low %vm74_vm0, %vm74_vm0  ;;  %v61_v5 = vld [vmem:[%s1355_s2 + $0x18] sm:$0xff]  ;;  %v62_v7 = vld [vmem:[%s1355_s2 + $0x20] sm:$0xff] }
  0x11   :  { %v856_v6 = vpack.c.bf16 %v61_v5, %v60_v2  ;;  %v42_v8 = vld [vmem:[%s1354_s1] sm:$0xff]  ;;  %v63_v9 = vld [vmem:[%s1355_s2 + $0x28] sm:$0xff]  ;;  %v1072_v13 = vld [vmem:[%s1354_s1 + $0x10] sm:$0xff] }
  0x12   :  { %852 = vmatprep.subr.msk.bf16.mxu0 %vm1031_vm1, %v850_v3  ;;  %898 = vmatprep.subr.msk.bf16.mxu1 %vm1031_vm1, %v850_v3  ;;  %v316_v10 = vmul.f32 %v42_v8, %v42_v8  ;;  %v50_v11 = vld [vmem:[%s1354_s1 + $0x40] sm:$0xff]  ;;  %v1066_v12 = vld [vmem:[%s1354_s1 + $0x8] sm:$0xff]  ;;  %v1077_v14 = vld [vmem:[%s1354_s1 + $0x18] sm:$0xff]  ;;  %v318_v16 = vmul.f32 %v1072_v13, %v1072_v13  ;;  %v862_v19 = vpack.c.bf16 %v63_v9, %v62_v7 }
  0x13   :  { %855 = vmatpush3.bf16.xpose.msk.msra.mxu0 %vm1031_vm1, %v850_v3  ;;  %906 = vmatpush3.bf16.xpose.msk.msra.mxu1 %vm1031_vm1, %v850_v3  ;;  %v317_v15 = vmul.f32 %v1066_v12, %v1066_v12  ;;  %v319_v18 = vmul.f32 %v1077_v14, %v1077_v14  ;;  %v1089_v20 = vld [vmem:[%s1354_s1 + $0x20] sm:$0xff]  ;;  %v1095_v22 = vld [vmem:[%s1354_s1 + $0x28] sm:$0xff] }
  0x14   :  { %858 = vmatprep.subr.msk.bf16.mxu0 %vm1031_vm1, %v856_v6  ;;  %899 = vmatprep.subr.msk.bf16.mxu1 %vm1031_vm1, %v856_v6  ;;  %v332_v17 = vsel %vm74_vm0, %v316_v10, 0.0  ;;  %v338_v21 = vsel %vm74_vm0, %v318_v16, 0.0  ;;  %v320_v24 = vmul.f32 %v1089_v20, %v1089_v20 }
  0x15   :  { %826 = vmatprep.mubr.msk.f32.mxu0 %vm74_vm0, %v42_v8  ;;  %838 = vmatprep.mubr.msk.f32.mxu1 %vm74_vm0, %v50_v11  ;;  %v335_v23 = vsel %vm74_vm0, %v317_v15, 0.0 }
  0x16   :  { %333 = vadd.xlane.f32.xlu0 %v332_v17  ;;  %339 = vadd.xlane.f32.xlu1 %v338_v21 }
  0x17   :  { %15 = vsyncpa [#allocation6], 0  ;;  %v341_v25 = vsel %vm74_vm0, %v319_v18, 0.0  ;;  %v321_v26 = vmul.f32 %v1095_v22, %v1095_v22  ;;  %v64_v27 = vld [vmem:[%s1355_s2 + $0x30] sm:$0xff]  ;;  %v65_v28 = vld [vmem:[%s1355_s2 + $0x38] sm:$0xff]  ;;  %v344_v31 = vsel %vm74_vm0, %v320_v24, 0.0  ;;  %v324_v36 = vmul.f32 %v50_v11, %v50_v11 }
  0x18   :  { %v1120_v29 = vld [vmem:[%s1354_s1 + $0x30] sm:$0xff]  ;;  %v1125_v30 = vld [vmem:[%s1354_s1 + $0x38] sm:$0xff]  ;;  %v868_v35 = vpack.c.bf16 %v65_v28, %v64_v27  ;;  %v1136_v37 = vld [vmem:[%s1354_s1 + $0x48] sm:$0xff] }
  0x19   :  { %v322_v32 = vmul.f32 %v1120_v29, %v1120_v29  ;;  %v347_v33 = vsel %vm74_vm0, %v321_v26, 0.0  ;;  %v323_v34 = vmul.f32 %v1125_v30, %v1125_v30  ;;  %v325_v40 = vmul.f32 %v1136_v37, %v1136_v37  ;;  %v66_v41 = vld [vmem:[%s1355_s2 + $0x40] sm:$0xff]  ;;  %v67_v42 = vld [vmem:[%s1355_s2 + $0x48] sm:$0xff]  ;;  %v52_v43 = vld [vmem:[%s1354_s1 + $0x50] sm:$0xff] }
  0x1a   :  { %336 = vadd.xlane.f32.xlu0 %v335_v23  ;;  %342 = vadd.xlane.f32.xlu1 %v341_v25  ;;  %v53_v44 = vld [vmem:[%s1354_s1 + $0x58] sm:$0xff]  ;;  %v356_v45 = vsel %vm74_vm0, %v324_v36, 0.0  ;;  %v326_v46 = vmul.f32 %v52_v43, %v52_v43  ;;  %v874_v49 = vpack.c.bf16 %v67_v42, %v66_v41  ;;  %v54_v50 = vld [vmem:[%s1354_s1 + $0x60] sm:$0xff]  ;;  %v55_v51 = vld [vmem:[%s1354_s1 + $0x68] sm:$0xff] }
  0x1b   :  { %861 = vmatpush3.bf16.xpose.msk.msra.mxu0 %vm1031_vm1, %v856_v6  ;;  %907 = vmatpush3.bf16.xpose.msk.msra.mxu1 %vm1031_vm1, %v856_v6  ;;  %v350_v38 = vsel %vm74_vm0, %v322_v32, 0.0  ;;  %v353_v39 = vsel %vm74_vm0, %v323_v34, 0.0  ;;  %v359_v47 = vsel %vm74_vm0, %v325_v40, 0.0  ;;  %v327_v48 = vmul.f32 %v53_v44, %v53_v44  ;;  %v68_v56 = vld [vmem:[%s1355_s2 + $0x50] sm:$0xff]  ;;  %v69_v57 = vld [vmem:[%s1355_s2 + $0x58] sm:$0xff]  ;;  %v70_v3 = vld [vmem:[%s1355_s2 + $0x60] sm:$0xff] }
  0x1c   :  { %864 = vmatprep.subr.msk.bf16.mxu0 %vm1031_vm1, %v862_v19  ;;  %900 = vmatprep.subr.msk.bf16.mxu1 %vm1031_vm1, %v862_v19  ;;  %v362_v52 = vsel %vm74_vm0, %v326_v46, 0.0  ;;  %v328_v53 = vmul.f32 %v54_v50, %v54_v50  ;;  %v329_v55 = vmul.f32 %v55_v51, %v55_v51  ;;  %v56_v58 = vld [vmem:[%s1354_s1 + $0x70] sm:$0xff]  ;;  %v57_v59 = vld [vmem:[%s1354_s1 + $0x78] sm:$0xff]  ;;  %v880_v0 = vpack.c.bf16 %v69_v57, %v68_v56  ;;  %v71_v5 = vld [vmem:[%s1355_s2 + $0x68] sm:$0xff] }
  0x1d   :  { %v365_v54 = vsel %vm74_vm0, %v327_v48, 0.0  ;;  %v330_v61 = vmul.f32 %v56_v58, %v56_v58  ;;  %v331_v63 = vmul.f32 %v57_v59, %v57_v59  ;;  %v886_v6 = vpack.c.bf16 %v71_v5, %v70_v3  ;;  %v72_v7 = vld [vmem:[%s1355_s2 + $0x70] sm:$0xff]  ;;  %v73_v8 = vld [vmem:[%s1355_s2 + $0x78] sm:$0xff]  ;;  %s761_s2 = sld [smem:[#allocation4 + $0x4]]  ;;  %v1269_v25 = vld [vmem:[%s1356_s3] ss:$0 sm:$0xff] }
  0x1e   :  { %345 = vadd.xlane.f32.xlu0 %v344_v31  ;;  %348 = vadd.xlane.f32.xlu1 %v347_v33  ;;  %v368_v60 = vsel %vm74_vm0, %v328_v53, 0.0  ;;  %v371_v62 = vsel %vm74_vm0, %v329_v55, 0.0  ;;  %v892_v9 = vpack.c.bf16 %v73_v8, %v72_v7  ;;  %s989_s3 = smov [#allocation5]  }
  0x1f   :  { %v374_v1 = vsel %vm74_vm0, %v330_v61, 0.0  ;;  %v377_v2 = vsel %vm74_vm0, %v331_v63, 0.0  ;;  %s717_s30 = sshll.u32 %s989_s3, 4  ;;  %s718_s30 = int_to_ptr.vmem [resolvable:$true] %s717_s30 }
  0x20   :  { %s962_s5 = scalar_lea.vmem %s718_s30, 2048  ;;  %p967_p6 = scmp.lt.s32.totalorder %s718_s30, %s718_s30 }
  0x21   :  { %p963_p5 = scmp.ne.s32.totalorder %s718_s30, %s962_s5  ;;  %p968_p7 = scmp.lt.s32.totalorder %s962_s5, %s962_s5 }
  0x22   :  { %351 = vadd.xlane.f32.xlu0 %v350_v38  ;;  %354 = vadd.xlane.f32.xlu1 %v353_v39 }
  0x23   :  { %867 = vmatpush3.bf16.xpose.msk.msra.mxu0 %vm1031_vm1, %v862_v19  ;;  %908 = vmatpush3.bf16.xpose.msk.msra.mxu1 %vm1031_vm1, %v862_v19  ;;  %v1271_v32 = vstv %s761_s2  ;;  %p969_p8 = por %p968_p7, %p967_p6 }
  0x24   :  { %870 = vmatprep.subr.msk.bf16.mxu0 %vm1031_vm1, %v868_v35  ;;  %901 = vmatprep.subr.msk.bf16.mxu1 %vm1031_vm1, %v868_v35 }
  0x25   :  { %p970_p9 = pnand %p969_p8, %p963_p5 }
  0x26   :  { %357 = vadd.xlane.f32.xlu0 %v356_v45  ;;  %360 = vadd.xlane.f32.xlu1 %v359_v47 }
  0x2a   :  { %363 = vadd.xlane.f32.xlu0 %v362_v52  ;;  %366 = vadd.xlane.f32.xlu1 %v365_v54 }
  0x2b   :  { %873 = vmatpush3.bf16.xpose.msk.msra.mxu0 %vm1031_vm1, %v868_v35  ;;  %909 = vmatpush3.bf16.xpose.msk.msra.mxu1 %vm1031_vm1, %v868_v35 }
  0x2c   :  { %876 = vmatprep.subr.msk.bf16.mxu0 %vm1031_vm1, %v874_v49  ;;  %902 = vmatprep.subr.msk.bf16.mxu1 %vm1031_vm1, %v874_v49 }
  0x2e   :  { %369 = vadd.xlane.f32.xlu0 %v368_v60  ;;  %372 = vadd.xlane.f32.xlu1 %v371_v62 }
  0x32   :  { %375 = vadd.xlane.f32.xlu0 %v374_v1  ;;  %378 = vadd.xlane.f32.xlu1 %v377_v2 }
  0x33   :  { %879 = vmatpush3.bf16.xpose.msk.msra.mxu0 %vm1031_vm1, %v874_v49  ;;  %910 = vmatpush3.bf16.xpose.msk.msra.mxu1 %vm1031_vm1, %v874_v49 }
  0x34   :  { %882 = vmatprep.subr.msk.bf16.mxu0 %vm1031_vm1, %v880_v0  ;;  %903 = vmatprep.subr.msk.bf16.mxu1 %vm1031_vm1, %v880_v0 }
  0x3b   :  { %885 = vmatpush3.bf16.xpose.msk.msra.mxu0 %vm1031_vm1, %v880_v0  ;;  %911 = vmatpush3.bf16.xpose.msk.msra.mxu1 %vm1031_vm1, %v880_v0 }
  0x3c   :  { %888 = vmatprep.subr.msk.bf16.mxu0 %vm1031_vm1, %v886_v6  ;;  %904 = vmatprep.subr.msk.bf16.mxu1 %vm1031_vm1, %v886_v6 }
  0x43   :  { %891 = vmatpush3.bf16.xpose.msk.msra.mxu0 %vm1031_vm1, %v886_v6  ;;  %912 = vmatpush3.bf16.xpose.msk.msra.mxu1 %vm1031_vm1, %v886_v6 }
  0x44   :  { %894 = vmatprep.subr.msk.bf16.mxu0 %vm1031_vm1, %v892_v9  ;;  %905 = vmatprep.subr.msk.bf16.mxu1 %vm1031_vm1, %v892_v9 }
  0x4b   :  { %897 = vmatpush3.bf16.xpose.msk.msra.mxu0 %vm1031_vm1, %v892_v9  ;;  %913 = vmatpush3.bf16.xpose.msk.msra.mxu1 %vm1031_vm1, %v892_v9 }
  0x52   :  { %827 = vmatmul.mubr.msk.f32.vlgmr.msra.gmra.mrb[0].mxu0 %vm74_vm0, %v1066_v12  ;;  %839 = vmatmul.mubr.msk.f32.vlgmr.msra.gmra.mrb[0].mxu1 %vm74_vm0, %v1136_v37 }
  0x53   :  { %829 = vmatprep.mubr.msk.f32.mxu0 %vm74_vm0, %v1072_v13  ;;  %841 = vmatprep.mubr.msk.f32.mxu1 %vm74_vm0, %v52_v43 }
  0x56   :  { %830 = vmatmul.mubr.msk.f32.gmra.mrb[2].mxu0 %vm74_vm0, %v1077_v14  ;;  %842 = vmatmul.mubr.msk.f32.gmra.mrb[2].mxu1 %vm74_vm0, %v53_v44 }
  0x57   :  { %832 = vmatprep.mubr.msk.f32.mxu0 %vm74_vm0, %v1089_v20  ;;  %844 = vmatprep.mubr.msk.f32.mxu1 %vm74_vm0, %v54_v50 }
  0x5a   :  { %833 = vmatmul.mubr.msk.f32.gmra.mrb[4].mxu0 %vm74_vm0, %v1095_v22  ;;  %845 = vmatmul.mubr.msk.f32.gmra.mrb[4].mxu1 %vm74_vm0, %v55_v51 }
  0x5b   :  { %835 = vmatprep.mubr.msk.f32.mxu0 %vm74_vm0, %v1120_v29  ;;  %847 = vmatprep.mubr.msk.f32.mxu1 %vm74_vm0, %v56_v58 }
  0x5e   :  { %836 = vmatmul.mubr.msk.f32.gmra.mrb[6].mxu0 %vm74_vm0, %v1125_v30  ;;  %848 = vmatmul.mubr.msk.f32.gmra.mrb[6].mxu1 %vm74_vm0, %v57_v59 }
  0xa3   :  { %v340_v4 = vpop.xlane.xlu1 %339  ;;  %v334_v10 = vpop.xlane.xlu0 %333 }
  0xa7   :  { %v343_v11 = vpop.xlane.xlu1 %342  ;;  %v337_v12 = vpop.xlane.xlu0 %336 }
  0xab   :  { %v1258_v13 = vpop.xlane.xlu1 %348  ;;  %v1260_v14 = vpop.xlane.xlu0 %345 }
  0xaf   :  { %v1262_v15 = vpop.xlane.xlu1 %354  ;;  %v1264_v16 = vpop.xlane.xlu0 %351 }
  0xb3   :  { %v361_v17 = vpop.xlane.xlu1 %360  ;;  %v358_v18 = vpop.xlane.xlu0 %357 }
  0xb7   :  { %v367_v30 = vpop.xlane.xlu1 %366  ;;  %v364_v31 = vpop.xlane.xlu0 %363 }
 0x125   :  { %v828_v19 = vpop.f32.mrb[0].mxu0  ;;  %v840_v20 = vpop.f32.mrb[0].mxu1 }
 0x126   :  { %v397_v21 = vmul.f32 2.0, %v828_v19  ;;  %v405_v22 = vmul.f32 2.0, %v840_v20  ;;  %v237_v23 = vpop.f32.mrb[1].mxu0  ;;  %v277_v24 = vpop.f32.mrb[1].mxu1 }
 0x127   :  { %v396_v26 = vmul.f32 2.0, %v237_v23  ;;  %v404_v27 = vmul.f32 2.0, %v277_v24 }
 0x128   :  { %v413_v28 = vsub.f32 %v337_v12, %v397_v21  ;;  %v421_v29 = vsub.f32 %v361_v17, %v405_v22  ;;  %v370_v12 = vpop.xlane.xlu0 %369 }
 0x129   :  { %v412_v33 = vsub.f32 %v334_v10, %v396_v26  ;;  %v420_v34 = vsub.f32 %v358_v18, %v404_v27  ;;  %v831_v35 = vpop.f32.mrb[2].mxu0  ;;  %v843_v36 = vpop.f32.mrb[2].mxu1 }
 0x12a   :  { %v487_v37 = vadd.f32 %v1269_v25, %v413_v28  ;;  %v495_v38 = vadd.f32 %v1269_v25, %v421_v29  ;;  %v399_v39 = vmul.f32 2.0, %v831_v35  ;;  %v407_v40 = vmul.f32 2.0, %v843_v36  ;;  %v247_v41 = vpop.f32.mrb[3].mxu0  ;;  %v287_v42 = vpop.f32.mrb[3].mxu1 }
 0x12b   :  { %v486_v43 = vadd.f32 %v1269_v25, %v412_v33  ;;  %v494_v44 = vadd.f32 %v1269_v25, %v420_v34  ;;  %v398_v45 = vmul.f32 2.0, %v247_v41  ;;  %v406_v46 = vmul.f32 2.0, %v287_v42 }
 0x12c   :  { %v503_v47 = vmax.f32 %v487_v37, 0.0  ;;  %v511_v48 = vmax.f32 %v495_v38, 0.0  ;;  %v415_v49 = vsub.f32 %v343_v11, %v399_v39  ;;  %v423_v50 = vsub.f32 %v367_v30, %v407_v40  ;;  %v373_v11 = vpop.xlane.xlu1 %372 }
 0x12d   :  { %v502_v51 = vmax.f32 %v486_v43, 0.0  ;;  %v510_v52 = vmax.f32 %v494_v44, 0.0  ;;  %v414_v53 = vsub.f32 %v340_v4, %v398_v45  ;;  %v422_v54 = vsub.f32 %v364_v31, %v406_v46  ;;  %v834_v55 = vpop.f32.mrb[4].mxu0  ;;  %v846_v56 = vpop.f32.mrb[4].mxu1 }
 0x12e   :  { %v521_v57 = vmul.f32 %v1271_v32, %v503_v47  ;;  %v529_v58 = vmul.f32 %v1271_v32, %v511_v48  ;;  %v489_v59 = vadd.f32 %v1269_v25, %v415_v49  ;;  %v497_v60 = vadd.f32 %v1269_v25, %v423_v50  ;;  %v257_v61 = vpop.f32.mrb[5].mxu0  ;;  %v297_v62 = vpop.f32.mrb[5].mxu1 }
 0x12f   :  { %v520_v63 = vmul.f32 %v1271_v32, %v502_v51  ;;  %v528_v0 = vmul.f32 %v1271_v32, %v510_v52  ;;  %v488_v1 = vadd.f32 %v1269_v25, %v414_v53  ;;  %v496_v2 = vadd.f32 %v1269_v25, %v422_v54  ;;  %v1299_v47 = vpop.xlane.xlu0 %375 }
 0x130   :  { %v538_v3 = vmul.f32 1.442695, %v521_v57  ;;  %v554_v5 = vmul.f32 1.442695, %v529_v58  ;;  %v505_v6 = vmax.f32 %v489_v59, 0.0  ;;  %v513_v7 = vmax.f32 %v497_v60, 0.0  ;;  %v1295_v43 = vpop.xlane.xlu1 %378 }
 0x131   :  { %v536_v8 = vmul.f32 1.442695, %v520_v63  ;;  %v552_v9 = vmul.f32 1.442695, %v528_v0  ;;  %v504_v4 = vmax.f32 %v488_v1, 0.0  ;;  %v512_v10 = vmax.f32 %v496_v2, 0.0 }
 0x132   :  { %918 = vpow2.f32 %v538_v3  ;;  %v523_v17 = vmul.f32 %v1271_v32, %v505_v6  ;;  %v531_v18 = vmul.f32 %v1271_v32, %v513_v7  ;;  %v401_v19 = vmul.f32 2.0, %v834_v55  ;;  %v837_v20 = vpop.f32.mrb[6].mxu0  ;;  %v849_v21 = vpop.f32.mrb[6].mxu1 }
 0x133   :  { %920 = vpow2.f32 %v536_v8  ;;  %v522_v22 = vmul.f32 %v1271_v32, %v504_v4  ;;  %v530_v23 = vmul.f32 %v1271_v32, %v512_v10  ;;  %v409_v24 = vmul.f32 2.0, %v846_v56  ;;  %v267_v26 = vpop.f32.mrb[7].mxu0  ;;  %v307_v27 = vpop.f32.mrb[7].mxu1 }
 0x134   :  { %922 = vpow2.f32 %v554_v5  ;;  %v542_v28 = vmul.f32 1.442695, %v523_v17  ;;  %v558_v29 = vmul.f32 1.442695, %v531_v18  ;;  %v417_v30 = vsub.f32 %v1258_v13, %v401_v19 }
 0x135   :  { %924 = vpow2.f32 %v552_v9  ;;  %v540_v31 = vmul.f32 1.442695, %v522_v22  ;;  %v556_v33 = vmul.f32 1.442695, %v530_v23  ;;  %v400_v34 = vmul.f32 2.0, %v257_v61 }
 0x136   :  { %926 = vpow2.f32 %v542_v28  ;;  %v491_v35 = vadd.f32 %v1269_v25, %v417_v30  ;;  %v408_v36 = vmul.f32 2.0, %v297_v62  ;;  %v425_v37 = vsub.f32 %v373_v11, %v409_v24 }
 0x137   :  { %928 = vpow2.f32 %v540_v31  ;;  %v416_v38 = vsub.f32 %v1260_v14, %v400_v34  ;;  %v403_v39 = vmul.f32 2.0, %v837_v20  ;;  %v1292_v40 = vmul.f32 2.0, %v849_v21 }
 0x138   :  { %930 = vpow2.f32 %v558_v29  ;;  %v507_v41 = vmax.f32 %v491_v35, 0.0  ;;  %v499_v42 = vadd.f32 %v1269_v25, %v425_v37  ;;  %v424_v13 = vsub.f32 %v370_v12, %v408_v36 }
 0x139   :  { %932 = vpow2.f32 %v556_v33  ;;  %v490_v44 = vadd.f32 %v1269_v25, %v416_v38  ;;  %v419_v45 = vsub.f32 %v1262_v15, %v403_v39  ;;  %v402_v46 = vmul.f32 2.0, %v267_v26 }
 0x13a   :  { %v525_v14 = vmul.f32 %v1271_v32, %v507_v41  ;;  %v515_v48 = vmax.f32 %v499_v42, 0.0  ;;  %v498_v49 = vadd.f32 %v1269_v25, %v424_v13  ;;  %v1303_v50 = vmul.f32 2.0, %v307_v27 }
 0x13b   :  { %v506_v51 = vmax.f32 %v490_v44, 0.0  ;;  %v1306_v52 = vadd.f32 %v1269_v25, %v419_v45  ;;  %v418_v53 = vsub.f32 %v1264_v16, %v402_v46  ;;  %v427_v54 = vsub.f32 %v1295_v43, %v1292_v40 }
 0x13c   :  { %v919_v15 = vpop.eup %918  ;;  %v546_v55 = vmul.f32 1.442695, %v525_v14  ;;  %v533_v56 = vmul.f32 %v1271_v32, %v515_v48  ;;  %v514_v57 = vmax.f32 %v498_v49, 0.0  ;;  %v426_v58 = vsub.f32 %v1299_v47, %v1303_v50 }
 0x13d   :  { %v921_v59 = vpop.eup %920  ;;  %v569_v60 = vmul.f32 %v919_v15, %v919_v15  ;;  %v524_v61 = vmul.f32 %v1271_v32, %v506_v51  ;;  %v509_v62 = vmax.f32 %v1306_v52, 0.0  ;;  %v1317_v63 = vadd.f32 %v1269_v25, %v418_v53 }
 0x13e   :  { %v923_v16 = vpop.eup %922  ;;  %v568_v0 = vmul.f32 %v921_v59, %v921_v59  ;;  %934 = vpow2.f32 %v546_v55  ;;  %v562_v1 = vmul.f32 1.442695, %v533_v56  ;;  %v1320_v2 = vmul.f32 %v1271_v32, %v514_v57 }
 0x13f   :  { %v925_v3 = vpop.eup %924  ;;  %v585_v5 = vadd.f32 %v919_v15, %v569_v60  ;;  %v601_v6 = vmul.f32 %v569_v60, %v569_v60  ;;  %v577_v7 = vmul.f32 %v923_v16, %v923_v16  ;;  %v1322_v8 = vmul.f32 1.442695, %v524_v61 }
 0x140   :  { %v927_v9 = vpop.eup %926  ;;  %v584_v4 = vadd.f32 %v921_v59, %v568_v0  ;;  %v600_v10 = vmul.f32 %v568_v0, %v568_v0  ;;  %v576_v11 = vmul.f32 %v925_v3, %v925_v3  ;;  %936 = vpow2.f32 %v562_v1 }
 0x141   :  { %v929_v12 = vpop.eup %928  ;;  %v617_v17 = vadd.f32 %v601_v6, %v585_v5  ;;  %v633_v18 = vmul.f32 %v601_v6, %v601_v6  ;;  %v593_v19 = vadd.f32 %v923_v16, %v577_v7  ;;  %v609_v20 = vmul.f32 %v577_v7, %v577_v7 }
 0x142   :  { %v931_v21 = vpop.eup %930  ;;  %v616_v22 = vadd.f32 %v600_v10, %v584_v4  ;;  %v632_v23 = vmul.f32 %v600_v10, %v600_v10  ;;  %v592_v24 = vadd.f32 %v925_v3, %v576_v11  ;;  %v608_v26 = vmul.f32 %v576_v11, %v576_v11 }
 0x143   :  { %v933_v27 = vpop.eup %932  ;;  %v649_v28 = vadd.f32 %v633_v18, %v617_v17  ;;  %v665_v29 = vmul.f32 %v633_v18, %v633_v18  ;;  %v625_v30 = vadd.f32 %v609_v20, %v593_v19  ;;  %v641_v31 = vmul.f32 %v609_v20, %v609_v20 }
 0x144   :  { %v648_v33 = vadd.f32 %v632_v23, %v616_v22  ;;  %v664_v34 = vmul.f32 %v632_v23, %v632_v23  ;;  %v624_v35 = vadd.f32 %v608_v26, %v592_v24  ;;  %v640_v36 = vmul.f32 %v608_v26, %v608_v26 }
 0x145   :  { %v681_v37 = vadd.f32 %v665_v29, %v649_v28  ;;  %v657_v38 = vadd.f32 %v641_v31, %v625_v30  ;;  %v673_v39 = vmul.f32 %v641_v31, %v641_v31  ;;  %v571_v41 = vmul.f32 %v927_v9, %v927_v9 }
 0x146   :  { %v680_v42 = vadd.f32 %v664_v34, %v648_v33  ;;  %v656_v13 = vadd.f32 %v640_v36, %v624_v35  ;;  %v672_v44 = vmul.f32 %v640_v36, %v640_v36  ;;  %v570_v45 = vmul.f32 %v929_v12, %v929_v12 }
 0x147   :  { %697 = vst [vmem:[#allocation5 + $0x8] sm:$0xff] %v681_v37  ;;  %v689_v46 = vadd.f32 %v673_v39, %v657_v38  ;;  %v587_v14 = vadd.f32 %v927_v9, %v571_v41  ;;  %v603_v48 = vmul.f32 %v571_v41, %v571_v41  ;;  %v579_v49 = vmul.f32 %v931_v21, %v931_v21 }
 0x148   :  { %v935_v51 = vpop.eup %934  ;;  %696 = vst [vmem:[#allocation5] sm:$0xff] %v680_v42  ;;  %v688_v53 = vadd.f32 %v672_v44, %v656_v13  ;;  %v586_v15 = vadd.f32 %v929_v12, %v570_v45  ;;  %v602_v55 = vmul.f32 %v570_v45, %v570_v45  ;;  %v578_v56 = vmul.f32 %v933_v27, %v933_v27 }
 0x149   :  { %705 = vst [vmem:[#allocation5 + $0x48] sm:$0xff] %v689_v46  ;;  %v619_v57 = vadd.f32 %v603_v48, %v587_v14  ;;  %v635_v59 = vmul.f32 %v603_v48, %v603_v48  ;;  %v595_v60 = vadd.f32 %v931_v21, %v579_v49  ;;  %v611_v61 = vmul.f32 %v579_v49, %v579_v49 }
 0x14a   :  { %v937_v16 = vpop.eup %936  ;;  %704 = vst [vmem:[#allocation5 + $0x40] sm:$0xff] %v688_v53  ;;  %v618_v0 = vadd.f32 %v602_v55, %v586_v15  ;;  %v634_v1 = vmul.f32 %v602_v55, %v602_v55  ;;  %v594_v3 = vadd.f32 %v933_v27, %v578_v56  ;;  %v610_v5 = vmul.f32 %v578_v56, %v578_v56 }
 0x14b   :  { %v651_v6 = vadd.f32 %v635_v59, %v619_v57  ;;  %v667_v7 = vmul.f32 %v635_v59, %v635_v59  ;;  %v627_v9 = vadd.f32 %v611_v61, %v595_v60  ;;  %v643_v4 = vmul.f32 %v611_v61, %v611_v61 }
 0x14c   :  { %v650_v10 = vadd.f32 %v634_v1, %v618_v0  ;;  %v666_v11 = vmul.f32 %v634_v1, %v634_v1  ;;  %v626_v12 = vadd.f32 %v610_v5, %v594_v3  ;;  %v642_v17 = vmul.f32 %v610_v5, %v610_v5 }
 0x14d   :  { %v683_v18 = vadd.f32 %v667_v7, %v651_v6  ;;  %v659_v19 = vadd.f32 %v643_v4, %v627_v9  ;;  %v675_v20 = vmul.f32 %v643_v4, %v643_v4  ;;  %v573_v22 = vmul.f32 %v935_v51, %v935_v51 }
 0x14e   :  { %v682_v21 = vadd.f32 %v666_v11, %v650_v10  ;;  %v658_v23 = vadd.f32 %v642_v17, %v626_v12  ;;  %v674_v24 = vmul.f32 %v642_v17, %v642_v17  ;;  %938 = vpow2.f32 %v1322_v8 }
 0x14f   :  { %699 = vst [vmem:[#allocation5 + $0x18] sm:$0xff] %v683_v18  ;;  %v691_v26 = vadd.f32 %v675_v20, %v659_v19  ;;  %v589_v27 = vadd.f32 %v935_v51, %v573_v22  ;;  %v605_v28 = vmul.f32 %v573_v22, %v573_v22  ;;  %v581_v29 = vmul.f32 %v937_v16, %v937_v16 }
 0x150   :  { %698 = vst [vmem:[#allocation5 + $0x10] sm:$0xff] %v682_v21  ;;  %v690_v30 = vadd.f32 %v674_v24, %v658_v23  ;;  %v560_v31 = vmul.f32 1.442695, %v1320_v2  ;;  %v527_v33 = vmul.f32 %v1271_v32, %v509_v62  ;;  %v508_v34 = vmax.f32 %v1317_v63, 0.0 }
 0x151   :  { %707 = vst [vmem:[#allocation5 + $0x58] sm:$0xff] %v691_v26  ;;  %v621_v35 = vadd.f32 %v605_v28, %v589_v27  ;;  %v637_v36 = vmul.f32 %v605_v28, %v605_v28  ;;  %v597_v37 = vadd.f32 %v937_v16, %v581_v29  ;;  %v613_v8 = vmul.f32 %v581_v29, %v581_v29 }
 0x152   :  { %706 = vst [vmem:[#allocation5 + $0x50] sm:$0xff] %v690_v30  ;;  %940 = vpow2.f32 %v560_v31  ;;  %v550_v38 = vmul.f32 1.442695, %v527_v33  ;;  %v526_v39 = vmul.f32 %v1271_v32, %v508_v34  ;;  %v501_v2 = vadd.f32 %v1269_v25, %v427_v54 }
 0x153   :  { %v653_v52 = vadd.f32 %v637_v36, %v621_v35  ;;  %v669_v41 = vmul.f32 %v637_v36, %v637_v36  ;;  %v629_v62 = vadd.f32 %v613_v8, %v597_v37  ;;  %v645_v42 = vmul.f32 %v613_v8, %v613_v8 }
 0x154   :  { %942 = vpow2.f32 %v550_v38  ;;  %v548_v63 = vmul.f32 1.442695, %v526_v39  ;;  %v517_v13 = vmax.f32 %v501_v2, 0.0  ;;  %v500_v44 = vadd.f32 %v1269_v25, %v426_v58 }
 0x155   :  { %v685_v45 = vadd.f32 %v669_v41, %v653_v52  ;;  %v661_v46 = vadd.f32 %v645_v42, %v629_v62  ;;  %v677_v14 = vmul.f32 %v645_v42, %v645_v42 }
 0x156   :  { %944 = vpow2.f32 %v548_v63  ;;  %v535_v40 = vmul.f32 %v1271_v32, %v517_v13  ;;  %v516_v43 = vmax.f32 %v500_v44, 0.0 }
 0x157   :  { %701 = vst [vmem:[#allocation5 + $0x28] sm:$0xff] %v685_v45  ;;  %v693_v54 = vadd.f32 %v677_v14, %v661_v46 }
 0x158   :  { %v939_v48 = vpop.eup %938  ;;  %v566_v49 = vmul.f32 1.442695, %v535_v40  ;;  %v534_v51 = vmul.f32 %v1271_v32, %v516_v43 }
 0x159   :  { %v572_v53 = vmul.f32 %v939_v48, %v939_v48  ;;  %709 = vst [vmem:[#allocation5 + $0x68] sm:$0xff] %v693_v54 }
 0x15a   :  { %946 = vpow2.f32 %v566_v49  ;;  %v564_v15 = vmul.f32 1.442695, %v534_v51 }
 0x15b   :  { %v588_v47 = vadd.f32 %v939_v48, %v572_v53  ;;  %v604_v50 = vmul.f32 %v572_v53, %v572_v53 }
 0x15c   :  { %v941_v25 = vpop.eup %940  ;;  %948 = vpow2.f32 %v564_v15 }
 0x15d   :  { %v620_v58 = vadd.f32 %v604_v50, %v588_v47  ;;  %v636_v55 = vmul.f32 %v604_v50, %v604_v50  ;;  %v580_v56 = vmul.f32 %v941_v25, %v941_v25 }
 0x15e   :  { %v943_v57 = vpop.eup %942 }
 0x15f   :  { %v652_v59 = vadd.f32 %v636_v55, %v620_v58  ;;  %v668_v60 = vmul.f32 %v636_v55, %v636_v55  ;;  %v596_v61 = vadd.f32 %v941_v25, %v580_v56  ;;  %v612_v16 = vmul.f32 %v580_v56, %v580_v56 }
 0x160   :  { %v945_v0 = vpop.eup %944  ;;  %v575_v1 = vmul.f32 %v943_v57, %v943_v57 }
 0x161   :  { %v684_v3 = vadd.f32 %v668_v60, %v652_v59  ;;  %v628_v32 = vadd.f32 %v612_v16, %v596_v61  ;;  %v644_v5 = vmul.f32 %v612_v16, %v612_v16  ;;  %v574_v6 = vmul.f32 %v945_v0, %v945_v0 }
 0x162   :  { %v591_v7 = vadd.f32 %v943_v57, %v575_v1  ;;  %v607_v9 = vmul.f32 %v575_v1, %v575_v1 }
 0x163   :  { %700 = vst [vmem:[#allocation5 + $0x20] sm:$0xff] %v684_v3  ;;  %v660_v4 = vadd.f32 %v644_v5, %v628_v32  ;;  %v676_v10 = vmul.f32 %v644_v5, %v644_v5  ;;  %v590_v11 = vadd.f32 %v945_v0, %v574_v6  ;;  %v606_v12 = vmul.f32 %v574_v6, %v574_v6 }
 0x164   :  { %v947_v17 = vpop.eup %946  ;;  %v623_v18 = vadd.f32 %v607_v9, %v591_v7  ;;  %v639_v19 = vmul.f32 %v607_v9, %v607_v9 }
 0x165   :  { %v692_v20 = vadd.f32 %v676_v10, %v660_v4  ;;  %v622_v22 = vadd.f32 %v606_v12, %v590_v11  ;;  %v638_v21 = vmul.f32 %v606_v12, %v606_v12  ;;  %v583_v23 = vmul.f32 %v947_v17, %v947_v17 }
 0x166   :  { %v949_v24 = vpop.eup %948  ;;  %v655_v26 = vadd.f32 %v639_v19, %v623_v18  ;;  %v671_v27 = vmul.f32 %v639_v19, %v639_v19 }
 0x167   :  { %708 = vst [vmem:[#allocation5 + $0x60] sm:$0xff] %v692_v20  ;;  %v654_v28 = vadd.f32 %v638_v21, %v622_v22  ;;  %v670_v29 = vmul.f32 %v638_v21, %v638_v21  ;;  %v599_v30 = vadd.f32 %v947_v17, %v583_v23  ;;  %v615_v31 = vmul.f32 %v583_v23, %v583_v23 }
 0x168   :  { %v687_v33 = vadd.f32 %v671_v27, %v655_v26  ;;  %v582_v34 = vmul.f32 %v949_v24, %v949_v24 }
 0x169   :  { %v686_v35 = vadd.f32 %v670_v29, %v654_v28  ;;  %v631_v36 = vadd.f32 %v615_v31, %v599_v30  ;;  %v647_v37 = vmul.f32 %v615_v31, %v615_v31 }
 0x16a   :  { %703 = vst [vmem:[#allocation5 + $0x38] sm:$0xff] %v687_v33  ;;  %v598_v8 = vadd.f32 %v949_v24, %v582_v34  ;;  %v614_v38 = vmul.f32 %v582_v34, %v582_v34 }
 0x16b   :  { %702 = vst [vmem:[#allocation5 + $0x30] sm:$0xff] %v686_v35  ;;  %v663_v39 = vadd.f32 %v647_v37, %v631_v36  ;;  %v679_v2 = vmul.f32 %v647_v37, %v647_v37 }
 0x16c   :  { %v630_v52 = vadd.f32 %v614_v38, %v598_v8  ;;  %v646_v41 = vmul.f32 %v614_v38, %v614_v38 }
 0x16d   :  { %v695_v62 = vadd.f32 %v679_v2, %v663_v39 }
 0x16e   :  { %v662_v42 = vadd.f32 %v646_v41, %v630_v52  ;;  %v678_v63 = vmul.f32 %v646_v41, %v646_v41 }
 0x16f   :  { %711 = vst [vmem:[#allocation5 + $0x78] sm:$0xff] %v695_v62 }
 0x170   :  { %v694_v13 = vadd.f32 %v678_v63, %v662_v42 }
 0x172   :  { %710 = vst [vmem:[#allocation5 + $0x70] sm:$0xff] %v694_v13 }
 0x173   :  { %973 = shalt.err (!%p970_p9)
}
 0x174   :  { %s974_s8 = scalar_lea.hbm %s1357_s4, 2048 }
 0x175   :  { %p975_p10 = scmp.ne.s32.totalorder %s1357_s4, %s974_s8  ;;  %p978_p11 = scmp.lt.u32.totalorder %s974_s8, %s1357_s4 }
 0x177   :  { %p980_p12 = pnand %p978_p11, %p975_p10 }
 0x179   :  { %983 = shalt.err (!%p980_p12)
}
 0x17a   :  { %s990_s13 = smov 128   ;;  %s991_s14 = smov 8  }
 0x17b   :  { %723 = dma.vmem_to_hbm [thread:$0]  %s718_s30, 2048, %s1357_s4, [#allocation6], %s990_s13, %s990_s13, %s991_s14  }
 0x17c   :  { %986 = dma.done.wait [#allocation6], 2048  }
 0x17d   :  { %987 = vsyncadd [#allocation6], 4294965248 }
 0x17e   :  { %727 = vsyncpa [#allocation6], 1 }

</bundles_post_ra>
